<compile_context>
chip_gen: v7x
topology: tpu7x:2x2x1
jax: 0.10.0
libtpu: 0.0.40
codegen_flags: <defaults>
</compile_context>

<pallas_src>
import jax
import jax.numpy as jnp
from jax import lax
from jax.experimental import pallas as pl
from jax.experimental.pallas import tpu as pltpu

EPS = 1e-5


def _bn_kernel(x_ref, gamma_ref, beta_ref, o_ref):
    # x_ref: (N, c_tile, HW); gamma/beta: (1, c_tile, 1); o_ref: (N, c_tile, HW)
    x = x_ref[...].astype(jnp.float32)
    n, _, hw = x.shape
    inv_m = 1.0 / float(n * hw)

    # One-pass per-channel statistics over (N, HW), f32 accumulators.
    s = jnp.sum(jnp.sum(x, axis=2, keepdims=True), axis=0, keepdims=True)
    ss = jnp.sum(jnp.sum(x * x, axis=2, keepdims=True), axis=0, keepdims=True)
    mean = s * inv_m                                   # (1, c_tile, 1)
    var = ss * inv_m - mean * mean                     # biased variance
    var = jnp.maximum(var, 0.0)                        # guard fp rounding
    inv_std = lax.rsqrt(var + EPS)

    scale = inv_std * gamma_ref[...]                   # (1, c_tile, 1)
    shift = beta_ref[...] - mean * scale               # (1, c_tile, 1)
    o_ref[...] = (x * scale + shift).astype(o_ref.dtype)


def batchnorm_pallas(x_nchw, gamma, beta, *, block_budget_bytes=2 * 1024 * 1024):
    """Training-mode batch norm on an NCHW tensor via a channel-tiled Pallas kernel."""
    n, c, h, w = x_nchw.shape
    hw = h * w

    # Free reshapes (contiguous trailing-dim merge, no data movement).
    x3 = x_nchw.reshape(n, c, hw)
    gamma3 = gamma.reshape(1, c, 1).astype(jnp.float32)
    beta3 = beta.reshape(1, c, 1).astype(jnp.float32)

    # Channel tile size: keep each (N, c_tile, HW) block under the budget so
    # 2x double-buffered inputs + 2x outputs stay well inside scoped VMEM on
    # every generation (v5e 16 MiB default, v7x 64 MiB physical).
    itemsize = jnp.dtype(x3.dtype).itemsize
    max_ct = max(1, block_budget_bytes // (n * hw * itemsize))
    if c % 8 != 0 or max_ct >= c:
        # Full channel dim (also covers C < 8, where tiling would violate the
        # sublane constraint anyway).
        c_tile = c
    else:
        c_tile = min(c, max(8, (min(max_ct, c) // 8) * 8))
    # Partial last channel tiles are safe: stats are per-channel and
    # out-of-range output rows are masked on writeback.
    # TODO(synk): if even a single 8-channel block (N*8*HW) exceeds VMEM, the
    # reduction axis would need tiling with scratch (sum, sumsq) accumulators.
    grid = (pl.cdiv(c, c_tile),)

    out3 = pl.pallas_call(
        _bn_kernel,
        out_shape=jax.ShapeDtypeStruct((n, c, hw), x3.dtype),
        grid_spec=pl.GridSpec(
            grid=grid,
            in_specs=[
                pl.BlockSpec((n, c_tile, hw), lambda i: (0, i, 0)),
                pl.BlockSpec((1, c_tile, 1), lambda i: (0, i, 0)),
                pl.BlockSpec((1, c_tile, 1), lambda i: (0, i, 0)),
            ],
            out_specs=pl.BlockSpec((n, c_tile, hw), lambda i: (0, i, 0)),
        ),
        compiler_params=pltpu.CompilerParams(
            dimension_semantics=("parallel",),
            vmem_limit_bytes=32 * 1024 * 1024,
        ),
    )(x3, gamma3, beta3)

    return out3.reshape(n, c, h, w)


def convert_output_forward(inputs, gamma, beta, in_index=(3,)):
    """JAX/Pallas equivalent of ConvertOutput.forward (resize_concat path)."""
    # --- _transform_inputs glue (plain JAX, no compute) ---
    flat = []
    for x in inputs:
        if isinstance(x, (list, tuple)):
            flat.extend(x)
        else:
            flat.append(x)
    flat = [x[:, :, None, None] if x.ndim == 2 else x for x in flat]
    selected = [flat[i] for i in in_index]
    # Bilinear resize to selected[0].shape[2:]: with a single selected tensor
    # the target equals its own size, so the resize is an exact identity.
    x = jnp.concatenate(selected, axis=1)
    # --- hot path: batch norm in Pallas ---
    # TODO(synk): SyncBatchNorm running_mean/running_var buffer updates (and
    # cross-device stat sync) are training bookkeeping that do not affect the
    # forward output; skipped.
    return batchnorm_pallas(x, gamma, beta)


def _reference_bn(x, gamma, beta):
    mean = jnp.mean(x, axis=(0, 2, 3), keepdims=True)
    var = jnp.var(x, axis=(0, 2, 3), keepdims=True)  # biased
    return (x - mean) / jnp.sqrt(var + EPS) * gamma[None, :, None, None] + beta[
        None, :, None, None
    ]


if __name__ == "__main__":
    key = jax.random.PRNGKey(0)
    k0, k1, k2, k3, kg, kb, k4, kg2, kb2 = jax.random.split(key, 9)

    # --- full ConvertOutput forward on the module-implied input list ---
    N, C, H, W = 2, 4, 16, 16  # inputs[3] — the only feature map actually used
    feats = [
        jax.random.normal(k0, (N, C, 8, 8), jnp.float32),   # unused level
        jax.random.normal(k1, (N, C), jnp.float32),          # 2-D -> expanded
        jax.random.normal(k2, (N, C, 4, 4), jnp.float32),    # unused level
        jax.random.normal(k3, (N, C, H, W), jnp.float32),    # in_index=[3]
    ]
    gamma = jax.random.normal(kg, (C,), jnp.float32) * 0.1 + 1.0
    beta = jax.random.normal(kb, (C,), jnp.float32) * 0.1

    out = convert_output_forward(feats, gamma, beta)
    out = jax.block_until_ready(out)
    ref = _reference_bn(feats[3], gamma, beta)
    assert out.shape == (N, C, H, W)
    assert jnp.allclose(out, ref, atol=1e-4, rtol=1e-4)

    # --- exercise the multi-tile channel grid (forced small block budget) ---
    x2 = jax.random.normal(k4, (2, 16, 16, 16), jnp.float32)
    gamma2 = jax.random.normal(kg2, (16,), jnp.float32) * 0.1 + 1.0
    beta2 = jax.random.normal(kb2, (16,), jnp.float32) * 0.1
    out2 = batchnorm_pallas(x2, gamma2, beta2, block_budget_bytes=16 * 1024)
    out2 = jax.block_until_ready(out2)
    ref2 = _reference_bn(x2, gamma2, beta2)
    assert jnp.allclose(out2, ref2, atol=1e-4, rtol=1e-4)

    print("KERNEL_OK")
</pallas_src>

<mosaic_0001>
module attributes {stable_mosaic.version = 11 : i64} {
  func.func @_bn_kernel(%arg0: i32, %arg1: memref<2x4x256xf32, #tpu.memory_space<vmem>>, %arg2: memref<1x4x1xf32, #tpu.memory_space<vmem>>, %arg3: memref<1x4x1xf32, #tpu.memory_space<vmem>>, %arg4: memref<2x4x256xf32, #tpu.memory_space<vmem>>) attributes {dimension_semantics = [#tpu.dimension_semantics<parallel>], iteration_bounds = array<i64: 1>, scalar_prefetch = 0 : i64, scratch_operands = 0 : i64, tpu.core_type = #tpu.core_type<tc>, window_params = [{transform_indices = @transform_0, window_bounds = array<i64: 2, 4, 256>}, {transform_indices = @transform_1, window_bounds = array<i64: 1, 4, 1>}, {transform_indices = @transform_2, window_bounds = array<i64: 1, 4, 1>}, {transform_indices = @transform_3, window_bounds = array<i64: 2, 4, 256>}]} {
    %c0 = arith.constant 0 : index
    %c0_0 = arith.constant 0 : index
    %c0_1 = arith.constant 0 : index
    %0 = vector.load %arg1[%c0, %c0_0, %c0_1] : memref<2x4x256xf32, #tpu.memory_space<vmem>>, vector<2x4x256xf32>
    %cst = arith.constant dense<0.000000e+00> : vector<2x4xf32>
    %1 = vector.multi_reduction <add>, %0, %cst [2] : vector<2x4x256xf32> to vector<2x4xf32>
    %2 = vector.shape_cast %1 : vector<2x4xf32> to vector<2x4x1xf32>
    %cst_2 = arith.constant dense<0.000000e+00> : vector<4x1xf32>
    %3 = vector.multi_reduction <add>, %2, %cst_2 [0] : vector<2x4x1xf32> to vector<4x1xf32>
    %4 = vector.shape_cast %3 : vector<4x1xf32> to vector<1x4x1xf32>
    %5 = arith.mulf %0, %0 : vector<2x4x256xf32>
    %cst_3 = arith.constant dense<0.000000e+00> : vector<2x4xf32>
    %6 = vector.multi_reduction <add>, %5, %cst_3 [2] : vector<2x4x256xf32> to vector<2x4xf32>
    %7 = vector.shape_cast %6 : vector<2x4xf32> to vector<2x4x1xf32>
    %cst_4 = arith.constant dense<0.000000e+00> : vector<4x1xf32>
    %8 = vector.multi_reduction <add>, %7, %cst_4 [0] : vector<2x4x1xf32> to vector<4x1xf32>
    %9 = vector.shape_cast %8 : vector<4x1xf32> to vector<1x4x1xf32>
    %cst_5 = arith.constant 0.001953125 : f32
    %10 = vector.broadcast %cst_5 : f32 to vector<1x4x1xf32>
    %11 = arith.mulf %4, %10 : vector<1x4x1xf32>
    %cst_6 = arith.constant 0.001953125 : f32
    %12 = vector.broadcast %cst_6 : f32 to vector<1x4x1xf32>
    %13 = arith.mulf %9, %12 : vector<1x4x1xf32>
    %14 = arith.mulf %11, %11 : vector<1x4x1xf32>
    %15 = arith.subf %13, %14 : vector<1x4x1xf32>
    %cst_7 = arith.constant 0.000000e+00 : f32
    %16 = vector.broadcast %cst_7 : f32 to vector<1x4x1xf32>
    %17 = arith.maximumf %15, %16 : vector<1x4x1xf32>
    %cst_8 = arith.constant 9.99999974E-6 : f32
    %18 = vector.broadcast %cst_8 : f32 to vector<1x4x1xf32>
    %19 = arith.addf %17, %18 : vector<1x4x1xf32>
    %20 = math.rsqrt %19 : vector<1x4x1xf32>
    %c0_9 = arith.constant 0 : index
    %c0_10 = arith.constant 0 : index
    %c0_11 = arith.constant 0 : index
    %21 = vector.load %arg2[%c0_9, %c0_10, %c0_11] : memref<1x4x1xf32, #tpu.memory_space<vmem>>, vector<1x4x1xf32>
    %22 = arith.mulf %20, %21 : vector<1x4x1xf32>
    %c0_12 = arith.constant 0 : index
    %c0_13 = arith.constant 0 : index
    %c0_14 = arith.constant 0 : index
    %23 = vector.load %arg3[%c0_12, %c0_13, %c0_14] : memref<1x4x1xf32, #tpu.memory_space<vmem>>, vector<1x4x1xf32>
    %24 = arith.mulf %11, %22 : vector<1x4x1xf32>
    %25 = arith.subf %23, %24 : vector<1x4x1xf32>
    %26 = vector.broadcast %22 : vector<1x4x1xf32> to vector<2x4x256xf32>
    %27 = arith.mulf %0, %26 : vector<2x4x256xf32>
    %28 = vector.broadcast %25 : vector<1x4x1xf32> to vector<2x4x256xf32>
    %29 = arith.addf %27, %28 : vector<2x4x256xf32>
    %c0_15 = arith.constant 0 : index
    %c0_16 = arith.constant 0 : index
    %c0_17 = arith.constant 0 : index
    %30 = vector.load %arg4[%c0_15, %c0_16, %c0_17] : memref<2x4x256xf32, #tpu.memory_space<vmem>>, vector<2x4x256xf32>
    tpu.vector_store %arg4[%c0_15, %c0_16, %c0_17], %29 {strides = array<i32>} : memref<2x4x256xf32, #tpu.memory_space<vmem>>, vector<2x4x256xf32>,
    return
  }
  func.func @transform_0(%arg0: i32) -> (i32, i32, i32) {
    %c0_i32 = arith.constant 0 : i32
    %c0_i32_0 = arith.constant 0 : i32
    %c0_i32_1 = arith.constant 0 : i32
    return %c0_i32, %arg0, %c0_i32_0 : i32, i32, i32
  }
  func.func @transform_1(%arg0: i32) -> (i32, i32, i32) {
    %c0_i32 = arith.constant 0 : i32
    %c0_i32_0 = arith.constant 0 : i32
    %c0_i32_1 = arith.constant 0 : i32
    return %c0_i32, %arg0, %c0_i32_0 : i32, i32, i32
  }
  func.func @transform_2(%arg0: i32) -> (i32, i32, i32) {
    %c0_i32 = arith.constant 0 : i32
    %c0_i32_0 = arith.constant 0 : i32
    %c0_i32_1 = arith.constant 0 : i32
    return %c0_i32, %arg0, %c0_i32_0 : i32, i32, i32
  }
  func.func @transform_3(%arg0: i32) -> (i32, i32, i32) {
    %c0_i32 = arith.constant 0 : i32
    %c0_i32_0 = arith.constant 0 : i32
    %c0_i32_1 = arith.constant 0 : i32
    return %c0_i32, %arg0, %c0_i32_0 : i32, i32, i32
  }
}

</mosaic_0001>

<bundles_post_ra>
// kernel: tpu_custom_call.1
= control target key start
LH: loop header
LB: loop body
LE: loop exit
PB: predicated region body
PF: predicated region fallthrough
CT: control target
= control target key end

     0   :  { %8 = vsyncpa [#allocation3], 0  ;;  %s281_s0 = inlined_call_operand.hbm [shape: f32[2,4,256], index: 0, kind: input, shape index: {}]   ;;  %s282_s1 = inlined_call_operand.vmem [shape: f32[1,4,1], index: 1, kind: input, shape index: {}]   ;;  %s283_s2 = inlined_call_operand.vmem [shape: f32[1,4,1], index: 2, kind: input, shape index: {}]   ;;  %s284_s3 = inlined_call_operand.hbm [shape: f32[2,4,256], index: 3, kind: output, shape index: {}]  }
   0x1   :  { %9 = vsyncpa [#allocation4], 0  ;;  %s191_s12 = smov [#allocation2]   ;;  %s143_s16 = scalar_lea.hbm %s281_s0, 256 }
   0x2   :  { %s15_s13 = sshll.u32 %s191_s12, 4  ;;  %p144_p0 = scmp.ne.s32.totalorder %s281_s0, %s143_s16  ;;  %s16_s13 = int_to_ptr.vmem [resolvable:$true] %s15_s13 }
   0x3   :  { %p147_p1 = scmp.lt.u32.totalorder %s143_s16, %s281_s0 }
   0x5   :  { %p149_p2 = pnand %p147_p1, %p144_p0 }
   0x7   :  { %152 = shalt.err (!%p149_p2)
}
   0x8   :  { %s153_s21 = scalar_lea.vmem %s16_s13, 256  ;;  %p158_p4 = scmp.lt.s32.totalorder %s16_s13, %s16_s13 }
   0x9   :  { %p154_p3 = scmp.ne.s32.totalorder %s16_s13, %s153_s21  ;;  %p159_p5 = scmp.lt.s32.totalorder %s153_s21, %s153_s21 }
   0xb   :  { %p160_p6 = por %p159_p5, %p158_p4 }
   0xd   :  { %p161_p7 = pnand %p160_p6, %p154_p3 }
   0xf   :  { %164 = shalt.err (!%p161_p7)
}
  0x10   :  { %s192_s22 = smov 128   ;;  %s193_s23 = smov 8  }
  0x11   :  { %21 = dma.hbm_to_vmem [thread:$0]  %s281_s0, 256, %s16_s13, [#allocation3], %s192_s22, %s192_s22, %s193_s23  }
  0x12   :  { %187 = dma.done.wait [#allocation3], 256  }
  0x13   :  { %188 = vsyncadd [#allocation3], 4294967040  ;;  %vm37_vm0 = vcmask 1043456   ;;  %v232_v0 = vld [vmem:[#allocation2] sm:$0xff]  ;;  %v234_v1 = vld [vmem:[#allocation2 + $0x8] sm:$0xff]  ;;  %v194_v20 = vmov 0   ;;  %v91_v45 = vlaneseq }
  0x14   :  { %v33_v2 = vcombine.high %v232_v0, %v232_v0  ;;  %v38_v3 = vsel %vm37_vm0, %v232_v0, 0.0  ;;  %v51_v4 = vmul.f32 %v232_v0, %v232_v0  ;;  %v34_v5 = vcombine.high %v234_v1, %v234_v1  ;;  %137 = vset.pattern.permute.xlu0 %v194_v20  ;;  %138 = vset.pattern.permute.xlu1 %v194_v20  ;;  %v79_v37 = vld [vmem:[%s282_s1] sm:$0xf]  ;;  %s196_s1 = smov [#allocation5]  }
  0x15   :  { %v43_v6 = vsel %vm37_vm0, %v234_v1, 0.0  ;;  %v52_v7 = vmul.f32 %v234_v1, %v234_v1  ;;  %v81_v40 = vld [vmem:[%s283_s2] sm:$0xf]  ;;  %v195_v43 = vmov 839922192   ;;  %v92_v47 = vshrl.u32 %v91_v45, 7 }
  0x16   :  { %v39_v8 = vsel %vm37_vm0, %v33_v2, 0.0  ;;  %v55_v9 = vcombine.high %v51_v4, %v51_v4  ;;  %v59_v10 = vsel %vm37_vm0, %v51_v4, 0.0  ;;  %v44_v11 = vsel %vm37_vm0, %v34_v5, 0.0  ;;  %s119_s29 = sshll.u32 %s196_s1, 4  ;;  %s120_s29 = int_to_ptr.vmem [resolvable:$true] %s119_s29 }
  0x17   :  { %v40_v12 = vadd.f32 %v39_v8, %v38_v3  ;;  %v56_v13 = vcombine.high %v52_v7, %v52_v7  ;;  %v64_v15 = vsel %vm37_vm0, %v52_v7, 0.0  ;;  %v45_v17 = vadd.f32 %v44_v11, %v43_v6  ;;  %s165_s2 = scalar_lea.vmem %s120_s29, 256  ;;  %p170_p9 = scmp.lt.s32.totalorder %s120_s29, %s120_s29 }
  0x18   :  { %v60_v14 = vsel %vm37_vm0, %v55_v9, 0.0  ;;  %v89_v44 = vunpack.c.l.s4 %v195_v43  ;;  %p166_p8 = scmp.ne.s32.totalorder %s120_s29, %s165_s2  ;;  %p171_p10 = scmp.lt.s32.totalorder %s165_s2, %s165_s2 }
  0x19   :  { %41 = vadd.xlane.f32.xlu0 %v40_v12  ;;  %v61_v16 = vadd.f32 %v60_v14, %v59_v10  ;;  %v65_v18 = vsel %vm37_vm0, %v56_v13, 0.0 }
  0x1a   :  { %v66_v19 = vadd.f32 %v65_v18, %v64_v15  ;;  %v90_v46 = vunpack.c.0.s8 %v89_v44  ;;  %p172_p11 = por %p171_p10, %p170_p9 }
  0x1b   :  { %62 = vadd.xlane.f32.xlu1 %v61_v16 }
  0x1c   :  { %v93_v48 = vsub.s32 %v90_v46, %v92_v47  ;;  %p173_p12 = pnand %p172_p11, %p166_p8 }
  0x1d   :  { %46 = vadd.xlane.f32.xlu0 %v45_v17 }
  0x1f   :  { %67 = vadd.xlane.f32.xlu1 %v66_v19 }
  0xa6   :  { %v42_v21 = vpop.xlane.xlu0 %41 }
  0xa7   :  { %v48_v24 = vsel %vm37_vm0, %v42_v21, 0.0 }
  0xa8   :  { %v63_v22 = vpop.xlane.xlu1 %62 }
  0xa9   :  { %v69_v28 = vsel %vm37_vm0, %v63_v22, 0.0 }
  0xaa   :  { %v47_v23 = vpop.xlane.xlu0 %46 }
  0xab   :  { %v49_v25 = vsel %vm37_vm0, %v47_v23, 0.0 }
  0xac   :  { %v50_v26 = vadd.f32 %v49_v25, %v48_v24  ;;  %v68_v27 = vpop.xlane.xlu1 %67 }
  0xad   :  { %v70_v29 = vsel %vm37_vm0, %v68_v27, 0.0 }
  0xae   :  { %v72_v30 = vmul.f32 0.001953125, %v50_v26  ;;  %v71_v31 = vadd.f32 %v70_v29, %v69_v28 }
  0xb0   :  { %v74_v32 = vmul.f32 %v72_v30, %v72_v30  ;;  %v73_v33 = vmul.f32 0.001953125, %v71_v31 }
  0xb2   :  { %v75_v34 = vsub.f32 %v73_v33, %v74_v32 }
  0xb4   :  { %v76_v35 = vmax.f32 %v75_v34, 0.0 }
  0xb6   :  { %v77_v36 = vadd.f32 1e-05, %v76_v35 }
  0xb8   :  { %141 = vrsqrt.f32 %v77_v36 }
  0xc2   :  { %v142_v38 = vpop.eup %141 }
  0xc3   :  { %v80_v39 = vmul.f32 %v142_v38, %v79_v37 }
  0xc5   :  { %86 = vperm.xlu0 %137, %v80_v39   ;;  %v82_v41 = vmul.f32 %v80_v39, %v72_v30 }
  0xc7   :  { %v83_v42 = vsub.f32 %v81_v40, %v82_v41 }
  0xc9   :  { %100 = vperm.xlu1 %138, %v83_v42  }
 0x144   :  { %v87_v49 = vpop.permute.xlu0 %86 }
 0x145   :  { %v94_v50 = vrot.slane %v87_v49, %v93_v48 }
 0x147   :  { %v96_v52 = vmul.f32 %v94_v50, %v232_v0  ;;  %v97_v53 = vmul.f32 %v94_v50, %v234_v1 }
 0x148   :  { %v101_v51 = vpop.permute.xlu1 %100 }
 0x149   :  { %v108_v54 = vrot.slane %v101_v51, %v93_v48 }
 0x14b   :  { %v110_v55 = vadd.f32 %v108_v54, %v96_v52  ;;  %v111_v56 = vadd.f32 %v108_v54, %v97_v53 }
 0x14d   :  { %112 = vst [vmem:[#allocation5] sm:$0xff] %v110_v55  ;;  %113 = vst [vmem:[#allocation5 + $0x8] sm:$0xff] %v111_v56 }
 0x14e   :  { %176 = shalt.err (!%p173_p12)
}
 0x14f   :  { %s177_s5 = scalar_lea.hbm %s284_s3, 256 }
 0x150   :  { %p178_p13 = scmp.ne.s32.totalorder %s284_s3, %s177_s5  ;;  %p181_p0 = scmp.lt.u32.totalorder %s177_s5, %s284_s3 }
 0x152   :  { %p183_p1 = pnand %p181_p0, %p178_p13 }
 0x154   :  { %186 = shalt.err (!%p183_p1)
}
 0x155   :  { %125 = dma.vmem_to_hbm [thread:$0]  %s120_s29, 256, %s284_s3, [#allocation4], %s192_s22, %s192_s22, %s193_s23  }
 0x156   :  { %189 = dma.done.wait [#allocation4], 256  }
 0x157   :  { %190 = vsyncadd [#allocation4], 4294967040 }
 0x158   :  { %129 = vsyncpa [#allocation3], 1 }
 0x159   :  { %130 = vsyncpa [#allocation4], 1 }

</bundles_post_ra>
